<compile_context>
chip_gen: v5e
topology: v5e:2x2
jax: 0.10.0
libtpu: 0.0.40
codegen_flags: <defaults>
</compile_context>

<pallas_src>
import jax
import jax.numpy as jnp
from jax.experimental import pallas as pl
from jax.experimental.pallas import tpu as pltpu

N_STATES = 128     # input feature size
HIDDEN = 50        # fc1 output features (PyTorch: nn.Linear(128, 50))
N_ACTIONS = 2      # out layer features (env.action_space.n == 2)

HIDDEN_PAD = 128   # pad hidden 50 -> 128 (zero cols; ReLU(0)=0, contributes 0)
OUT_PAD = 128      # pad output 2 -> 128 so the output store is lane-dense
BATCH_TILE = 256   # rows per grid step (tile VMEM: ~0.25 MiB double-buffered)


# ----------------------------------------------------------------------------
# Fused kernel: o = relu(x @ W1 + b1) @ W2 + b2
# Weights/biases are grid-resident (same block every step); only x / o tile.
# The hidden activation never leaves VMEM.
# ----------------------------------------------------------------------------
def _net_kernel(x_ref, w1_ref, b1_ref, w2_ref, b2_ref, o_ref):
    h = jnp.dot(x_ref[...], w1_ref[...], preferred_element_type=jnp.float32)
    h = jnp.maximum(h + b1_ref[...], 0.0)
    o = jnp.dot(h, w2_ref[...], preferred_element_type=jnp.float32)
    o_ref[...] = o + b2_ref[...]


# ----------------------------------------------------------------------------
# One-time parameter preparation: transpose the PyTorch (out, in) Linear
# weights into matmul layout and zero-pad to lane-friendly widths.  This is a
# constant transform done once, outside the hot path.
# ----------------------------------------------------------------------------
def prepare_params(params):
    w1 = params["fc1_w"].astype(jnp.float32)   # (HIDDEN, N_STATES)  torch layout
    b1 = params["fc1_b"].astype(jnp.float32)   # (HIDDEN,)
    w2 = params["out_w"].astype(jnp.float32)   # (N_ACTIONS, HIDDEN)
    b2 = params["out_b"].astype(jnp.float32)   # (N_ACTIONS,)

    w1_mat = jnp.zeros((N_STATES, HIDDEN_PAD), jnp.float32)
    w1_mat = w1_mat.at[:, :HIDDEN].set(w1.T)
    b1_vec = jnp.zeros((1, HIDDEN_PAD), jnp.float32).at[0, :HIDDEN].set(b1)

    w2_mat = jnp.zeros((HIDDEN_PAD, OUT_PAD), jnp.float32)
    w2_mat = w2_mat.at[:HIDDEN, :N_ACTIONS].set(w2.T)
    b2_vec = jnp.zeros((1, OUT_PAD), jnp.float32).at[0, :N_ACTIONS].set(b2)

    return {"w1": w1_mat, "b1": b1_vec, "w2": w2_mat, "b2": b2_vec}


# ----------------------------------------------------------------------------
# Forward pass: single fused pallas_call, grid over batch tiles.
# ----------------------------------------------------------------------------
def net_forward(x, prep):
    """x: (B, N_STATES) float32 -> (B, N_ACTIONS) float32."""
    B = x.shape[0]
    x = x.astype(jnp.float32)
    n_tiles = pl.cdiv(B, BATCH_TILE)
    Bp = n_tiles * BATCH_TILE
    if Bp != B:
        x = jnp.pad(x, ((0, Bp - B), (0, 0)))

    flops = 2 * Bp * (N_STATES * HIDDEN_PAD + HIDDEN_PAD * OUT_PAD)
    bytes_accessed = 4 * (Bp * N_STATES + Bp * OUT_PAD
                          + N_STATES * HIDDEN_PAD + HIDDEN_PAD
                          + HIDDEN_PAD * OUT_PAD + OUT_PAD)

    out_padded = pl.pallas_call(
        _net_kernel,
        out_shape=jax.ShapeDtypeStruct((Bp, OUT_PAD), jnp.float32),
        grid_spec=pltpu.PrefetchScalarGridSpec(
            num_scalar_prefetch=0,
            grid=(n_tiles,),
            in_specs=[
                # batch-tiled input
                pl.BlockSpec((BATCH_TILE, N_STATES), lambda i: (i, 0)),
                # grid-resident weights / biases (always block (0, 0))
                pl.BlockSpec((N_STATES, HIDDEN_PAD), lambda i: (0, 0)),
                pl.BlockSpec((1, HIDDEN_PAD), lambda i: (0, 0)),
                pl.BlockSpec((HIDDEN_PAD, OUT_PAD), lambda i: (0, 0)),
                pl.BlockSpec((1, OUT_PAD), lambda i: (0, 0)),
            ],
            out_specs=pl.BlockSpec((BATCH_TILE, OUT_PAD), lambda i: (i, 0)),
        ),
        compiler_params=pltpu.CompilerParams(
            dimension_semantics=("parallel",)),
        cost_estimate=pl.CostEstimate(
            flops=flops, transcendentals=0, bytes_accessed=bytes_accessed),
    )(x, prep["w1"], prep["b1"], prep["w2"], prep["b2"])

    return out_padded[:B, :N_ACTIONS]


# ----------------------------------------------------------------------------
# Deterministic parameter init mirroring the PyTorch module:
#   weights ~ Normal(0, 0.1) (weight.data.normal_(0, 0.1)),
#   biases keep nn.Linear's default U(-1/sqrt(fan_in), 1/sqrt(fan_in)).
# ----------------------------------------------------------------------------
def init_params(key):
    k1, k2, k3, k4 = jax.random.split(key, 4)
    return {
        "fc1_w": 0.1 * jax.random.normal(k1, (HIDDEN, N_STATES), jnp.float32),
        "fc1_b": jax.random.uniform(k2, (HIDDEN,), jnp.float32,
                                    -1.0 / N_STATES ** 0.5,
                                    1.0 / N_STATES ** 0.5),
        "out_w": 0.1 * jax.random.normal(k3, (N_ACTIONS, HIDDEN), jnp.float32),
        "out_b": jax.random.uniform(k4, (N_ACTIONS,), jnp.float32,
                                    -1.0 / HIDDEN ** 0.5,
                                    1.0 / HIDDEN ** 0.5),
    }


if __name__ == "__main__":
    key = jax.random.PRNGKey(0)
    k_params, k_x = jax.random.split(key)
    params = init_params(k_params)
    prep = prepare_params(params)

    # Small example batch of observations encoded as N_STATES features.
    x = jax.random.uniform(k_x, (2, N_STATES), dtype=jnp.float32)

    out = jax.jit(net_forward)(x, prep)
    out = jax.block_until_ready(out)

    # Pure-JAX reference of the PyTorch forward pass.
    ref = jnp.maximum(x @ params["fc1_w"].T + params["fc1_b"], 0.0)
    ref = ref @ params["out_w"].T + params["out_b"]

    assert out.shape == (2, N_ACTIONS), out.shape
    assert bool(jnp.all(jnp.isfinite(out)))
    assert bool(jnp.allclose(out, ref, atol=1e-4, rtol=1e-4)), "mismatch vs ref"
    print("KERNEL_OK")
</pallas_src>

<mosaic_0001>
module attributes {stable_mosaic.version = 11 : i64} {
  func.func @_net_kernel(%arg0: i32, %arg1: memref<256x128xf32, #tpu.memory_space<vmem>>, %arg2: memref<128x128xf32, #tpu.memory_space<vmem>>, %arg3: memref<1x128xf32, #tpu.memory_space<vmem>>, %arg4: memref<128x128xf32, #tpu.memory_space<vmem>>, %arg5: memref<1x128xf32, #tpu.memory_space<vmem>>, %arg6: memref<256x128xf32, #tpu.memory_space<vmem>>) attributes {dimension_semantics = [#tpu.dimension_semantics<parallel>], iteration_bounds = array<i64: 1>, scalar_prefetch = 0 : i64, scratch_operands = 0 : i64, tpu.core_type = #tpu.core_type<tc>, window_params = [{transform_indices = @transform_0, window_bounds = array<i64: 256, 128>}, {pipeline_mode = #tpu.pipeline_mode<synchronous>, transform_indices = @transform_1, window_bounds = array<i64: 128, 128>}, {pipeline_mode = #tpu.pipeline_mode<synchronous>, transform_indices = @transform_2, window_bounds = array<i64: 1, 128>}, {pipeline_mode = #tpu.pipeline_mode<synchronous>, transform_indices = @transform_3, window_bounds = array<i64: 128, 128>}, {pipeline_mode = #tpu.pipeline_mode<synchronous>, transform_indices = @transform_4, window_bounds = array<i64: 1, 128>}, {transform_indices = @transform_5, window_bounds = array<i64: 256, 128>}]} {
    %c0 = arith.constant 0 : index
    %c0_0 = arith.constant 0 : index
    %0 = vector.load %arg1[%c0, %c0_0] : memref<256x128xf32, #tpu.memory_space<vmem>>, vector<256x128xf32>
    %c0_1 = arith.constant 0 : index
    %c0_2 = arith.constant 0 : index
    %1 = vector.load %arg2[%c0_1, %c0_2] : memref<128x128xf32, #tpu.memory_space<vmem>>, vector<128x128xf32>
    %cst = arith.constant dense<0.000000e+00> : vector<256x128xf32>
    %2 = tpu.matmul %0, %1, %cst {dimension_numbers = #tpu.dot_dimension_numbers<[1], [0], [0], [1], [0, 0, 1, 1], [], []>} : vector<256x128xf32>, vector<128x128xf32>, vector<256x128xf32> -> vector<256x128xf32>
    %c0_3 = arith.constant 0 : index
    %c0_4 = arith.constant 0 : index
    %3 = vector.load %arg3[%c0_3, %c0_4] : memref<1x128xf32, #tpu.memory_space<vmem>>, vector<1x128xf32>
    %4 = vector.broadcast %3 : vector<1x128xf32> to vector<256x128xf32>
    %5 = arith.addf %2, %4 : vector<256x128xf32>
    %cst_5 = arith.constant 0.000000e+00 : f32
    %6 = vector.broadcast %cst_5 : f32 to vector<256x128xf32>
    %7 = arith.maximumf %5, %6 : vector<256x128xf32>
    %c0_6 = arith.constant 0 : index
    %c0_7 = arith.constant 0 : index
    %8 = vector.load %arg4[%c0_6, %c0_7] : memref<128x128xf32, #tpu.memory_space<vmem>>, vector<128x128xf32>
    %cst_8 = arith.constant dense<0.000000e+00> : vector<256x128xf32>
    %9 = tpu.matmul %7, %8, %cst_8 {dimension_numbers = #tpu.dot_dimension_numbers<[1], [0], [0], [1], [0, 0, 1, 1], [], []>} : vector<256x128xf32>, vector<128x128xf32>, vector<256x128xf32> -> vector<256x128xf32>
    %c0_9 = arith.constant 0 : index
    %c0_10 = arith.constant 0 : index
    %10 = vector.load %arg5[%c0_9, %c0_10] : memref<1x128xf32, #tpu.memory_space<vmem>>, vector<1x128xf32>
    %11 = vector.broadcast %10 : vector<1x128xf32> to vector<256x128xf32>
    %12 = arith.addf %9, %11 : vector<256x128xf32>
    %c0_11 = arith.constant 0 : index
    %c0_12 = arith.constant 0 : index
    %13 = vector.load %arg6[%c0_11, %c0_12] : memref<256x128xf32, #tpu.memory_space<vmem>>, vector<256x128xf32>
    tpu.vector_store %arg6[%c0_11, %c0_12], %12 {strides = array<i32>} : memref<256x128xf32, #tpu.memory_space<vmem>>, vector<256x128xf32>,
    return
  }
  func.func @transform_0(%arg0: i32) -> (i32, i32) {
    %c0_i32 = arith.constant 0 : i32
    %c0_i32_0 = arith.constant 0 : i32
    return %arg0, %c0_i32 : i32, i32
  }
  func.func @transform_1(%arg0: i32) -> (i32, i32) {
    %c0_i32 = arith.constant 0 : i32
    %c0_i32_0 = arith.constant 0 : i32
    %c0_i32_1 = arith.constant 0 : i32
    return %c0_i32, %c0_i32_0 : i32, i32
  }
  func.func @transform_2(%arg0: i32) -> (i32, i32) {
    %c0_i32 = arith.constant 0 : i32
    %c0_i32_0 = arith.constant 0 : i32
    %c0_i32_1 = arith.constant 0 : i32
    return %c0_i32, %c0_i32_0 : i32, i32
  }
  func.func @transform_3(%arg0: i32) -> (i32, i32) {
    %c0_i32 = arith.constant 0 : i32
    %c0_i32_0 = arith.constant 0 : i32
    %c0_i32_1 = arith.constant 0 : i32
    return %c0_i32, %c0_i32_0 : i32, i32
  }
  func.func @transform_4(%arg0: i32) -> (i32, i32) {
    %c0_i32 = arith.constant 0 : i32
    %c0_i32_0 = arith.constant 0 : i32
    %c0_i32_1 = arith.constant 0 : i32
    return %c0_i32, %c0_i32_0 : i32, i32
  }
  func.func @transform_5(%arg0: i32) -> (i32, i32) {
    %c0_i32 = arith.constant 0 : i32
    %c0_i32_0 = arith.constant 0 : i32
    return %arg0, %c0_i32 : i32, i32
  }
}

</mosaic_0001>

<bundles_post_ra>
// kernel: net_forward.1
= control target key start
LH: loop header
LB: loop body
LE: loop exit
PB: predicated region body
PF: predicated region fallthrough
CT: control target
= control target key end

     0   :  { %s812_s1 = inlined_call_operand.vmem [shape: f32[128,128], index: 1, kind: input, shape index: {}]   ;;  %s813_s2 = inlined_call_operand.vmem [shape: f32[1,128], index: 2, kind: input, shape index: {}]   ;;  %s814_s0 = inlined_call_operand.vmem [shape: f32[256,128], index: 0, kind: input, shape index: {}]   ;;  %s815_s3 = inlined_call_operand.vmem [shape: f32[128,128], index: 3, kind: input, shape index: {}]   ;;  %s816_s4 = inlined_call_operand.vmem [shape: f32[1,128], index: 4, kind: input, shape index: {}]   ;;  %s817_s5 = inlined_call_operand.vmem [shape: f32[256,128], index: 5, kind: output, shape index: {}]  }
   0x1   :  { %v67_v0 = vld [vmem:[%s812_s1 + $0x78] sm:$0xff]  ;;  %v66_v1 = vld [vmem:[%s812_s1 + $0x70] sm:$0xff]  ;;  %v65_v2 = vld [vmem:[%s812_s1 + $0x68] sm:$0xff] }
   0x2   :  { %386 = vmatpush.msra.mxu2 %v67_v0  ;;  %72 = vmatpush.msra.mxu0 %v67_v0  ;;  %v64_v3 = vld [vmem:[%s812_s1 + $0x60] sm:$0xff]  ;;  %v63_v4 = vld [vmem:[%s812_s1 + $0x58] sm:$0xff]  ;;  %v62_v5 = vld [vmem:[%s812_s1 + $0x50] sm:$0xff] }
   0x3   :  { %v61_v6 = vld [vmem:[%s812_s1 + $0x48] sm:$0xff]  ;;  %v60_v7 = vld [vmem:[%s812_s1 + $0x40] sm:$0xff]  ;;  %v59_v8 = vld [vmem:[%s812_s1 + $0x38] sm:$0xff] }
   0x4   :  { %387 = vmatpush.msra.mxu2 %v66_v1  ;;  %73 = vmatpush.msra.mxu0 %v66_v1  ;;  %v58_v9 = vld [vmem:[%s812_s1 + $0x30] sm:$0xff]  ;;  %v57_v10 = vld [vmem:[%s812_s1 + $0x28] sm:$0xff]  ;;  %v56_v11 = vld [vmem:[%s812_s1 + $0x20] sm:$0xff] }
   0x5   :  { %v55_v12 = vld [vmem:[%s812_s1 + $0x18] sm:$0xff]  ;;  %v54_v13 = vld [vmem:[%s812_s1 + $0x10] sm:$0xff]  ;;  %v53_v14 = vld [vmem:[%s812_s1 + $0x8] sm:$0xff] }
   0x6   :  { %388 = vmatpush.msra.mxu2 %v65_v2  ;;  %74 = vmatpush.msra.mxu0 %v65_v2  ;;  %v52_v15 = vld [vmem:[%s812_s1] sm:$0xff]  ;;  %v37_v18 = vld [vmem:[%s814_s0 + $0x88] sm:$0xff]  ;;  %v38_v20 = vld [vmem:[%s814_s0 + $0x90] sm:$0xff] }
   0x7   :  { %v36_v16 = vld [vmem:[%s814_s0 + $0x80] sm:$0xff]  ;;  %v21_v19 = vld [vmem:[%s814_s0 + $0x8] sm:$0xff]  ;;  %v22_v21 = vld [vmem:[%s814_s0 + $0x10] sm:$0xff] }
   0x8   :  { %389 = vmatpush.msra.mxu2 %v64_v3  ;;  %75 = vmatpush.msra.mxu0 %v64_v3  ;;  %v20_v17 = vld [vmem:[%s814_s0] sm:$0xff]  ;;  %v39_v22 = vld [vmem:[%s814_s0 + $0x98] sm:$0xff]  ;;  %v41_v26 = vld [vmem:[%s814_s0 + $0xa8] sm:$0xff] }
   0x9   :  { %v23_v23 = vld [vmem:[%s814_s0 + $0x18] sm:$0xff]  ;;  %v40_v24 = vld [vmem:[%s814_s0 + $0xa0] sm:$0xff]  ;;  %v25_v27 = vld [vmem:[%s814_s0 + $0x28] sm:$0xff] }
   0xa   :  { %390 = vmatpush.msra.mxu2 %v63_v4  ;;  %76 = vmatpush.msra.mxu0 %v63_v4  ;;  %v24_v25 = vld [vmem:[%s814_s0 + $0x20] sm:$0xff]  ;;  %v42_v28 = vld [vmem:[%s814_s0 + $0xb0] sm:$0xff]  ;;  %v43_v30 = vld [vmem:[%s814_s0 + $0xb8] sm:$0xff] }
   0xb   :  { %v26_v29 = vld [vmem:[%s814_s0 + $0x30] sm:$0xff]  ;;  %v27_v31 = vld [vmem:[%s814_s0 + $0x38] sm:$0xff]  ;;  %v44_v32 = vld [vmem:[%s814_s0 + $0xc0] sm:$0xff] }
   0xc   :  { %391 = vmatpush.msra.mxu2 %v62_v5  ;;  %77 = vmatpush.msra.mxu0 %v62_v5  ;;  %v28_v33 = vld [vmem:[%s814_s0 + $0x40] sm:$0xff]  ;;  %v45_v34 = vld [vmem:[%s814_s0 + $0xc8] sm:$0xff]  ;;  %v232_v36 = vld [vmem:[%s815_s3 + $0x78] sm:$0xff] }
   0xd   :  { %v29_v35 = vld [vmem:[%s814_s0 + $0x48] sm:$0xff]  ;;  %v231_v37 = vld [vmem:[%s815_s3 + $0x70] sm:$0xff]  ;;  %402 = vmatpush.msra.mxu3 %v232_v36  ;;  %237 = vmatpush.msra.mxu1 %v232_v36  ;;  %v229_v39 = vld [vmem:[%s815_s3 + $0x60] sm:$0xff] }
   0xe   :  { %392 = vmatpush.msra.mxu2 %v61_v6  ;;  %78 = vmatpush.msra.mxu0 %v61_v6  ;;  %v230_v38 = vld [vmem:[%s815_s3 + $0x68] sm:$0xff]  ;;  %v46_v40 = vld [vmem:[%s814_s0 + $0xd0] sm:$0xff]  ;;  %v228_v42 = vld [vmem:[%s815_s3 + $0x58] sm:$0xff] }
   0xf   :  { %403 = vmatpush.msra.mxu3 %v231_v37  ;;  %238 = vmatpush.msra.mxu1 %v231_v37  ;;  %v30_v41 = vld [vmem:[%s814_s0 + $0x50] sm:$0xff]  ;;  %v226_v44 = vld [vmem:[%s815_s3 + $0x48] sm:$0xff]  ;;  %v225_v45 = vld [vmem:[%s815_s3 + $0x40] sm:$0xff] }
  0x10   :  { %393 = vmatpush.msra.mxu2 %v60_v7  ;;  %79 = vmatpush.msra.mxu0 %v60_v7  ;;  %v227_v43 = vld [vmem:[%s815_s3 + $0x50] sm:$0xff]  ;;  %v47_v46 = vld [vmem:[%s814_s0 + $0xd8] sm:$0xff]  ;;  %v222_v50 = vld [vmem:[%s815_s3 + $0x28] sm:$0xff] }
  0x11   :  { %404 = vmatpush.msra.mxu3 %v230_v38  ;;  %239 = vmatpush.msra.mxu1 %v230_v38  ;;  %v31_v47 = vld [vmem:[%s814_s0 + $0x58] sm:$0xff]  ;;  %v223_v49 = vld [vmem:[%s815_s3 + $0x30] sm:$0xff]  ;;  %v221_v51 = vld [vmem:[%s815_s3 + $0x20] sm:$0xff] }
  0x12   :  { %394 = vmatpush.msra.mxu2 %v59_v8  ;;  %80 = vmatpush.msra.mxu0 %v59_v8  ;;  %v224_v48 = vld [vmem:[%s815_s3 + $0x38] sm:$0xff]  ;;  %v48_v52 = vld [vmem:[%s814_s0 + $0xe0] sm:$0xff]  ;;  %v219_v55 = vld [vmem:[%s815_s3 + $0x10] sm:$0xff] }
  0x13   :  { %405 = vmatpush.msra.mxu3 %v229_v39  ;;  %240 = vmatpush.msra.mxu1 %v229_v39  ;;  %v32_v53 = vld [vmem:[%s814_s0 + $0x60] sm:$0xff]  ;;  %v220_v54 = vld [vmem:[%s815_s3 + $0x18] sm:$0xff]  ;;  %v218_v56 = vld [vmem:[%s815_s3 + $0x8] sm:$0xff] }
  0x14   :  { %395 = vmatpush.msra.mxu2 %v58_v9  ;;  %81 = vmatpush.msra.mxu0 %v58_v9  ;;  %v49_v57 = vld [vmem:[%s814_s0 + $0xe8] sm:$0xff]  ;;  %v217_v59 = vld [vmem:[%s815_s3] sm:$0xff]  ;;  %v50_v60 = vld [vmem:[%s814_s0 + $0xf0] sm:$0xff] }
  0x15   :  { %406 = vmatpush.msra.mxu3 %v228_v42  ;;  %241 = vmatpush.msra.mxu1 %v228_v42  ;;  %v33_v58 = vld [vmem:[%s814_s0 + $0x68] sm:$0xff]  ;;  %v34_v61 = vld [vmem:[%s814_s0 + $0x70] sm:$0xff]  ;;  %v51_v62 = vld [vmem:[%s814_s0 + $0xf8] sm:$0xff] }
  0x16   :  { %396 = vmatpush.msra.mxu2 %v57_v10  ;;  %82 = vmatpush.msra.mxu0 %v57_v10  ;;  %v35_v63 = vld [vmem:[%s814_s0 + $0x78] sm:$0xff]  ;;  %v645_v0 = vld [vmem:[%s813_s2] ss:$0 sm:$0xff] }
  0x17   :  { %407 = vmatpush.msra.mxu3 %v227_v43  ;;  %242 = vmatpush.msra.mxu1 %v227_v43 }
  0x18   :  { %397 = vmatpush.msra.mxu2 %v56_v11  ;;  %83 = vmatpush.msra.mxu0 %v56_v11 }
  0x19   :  { %408 = vmatpush.msra.mxu3 %v226_v44  ;;  %243 = vmatpush.msra.mxu1 %v226_v44 }
  0x1a   :  { %398 = vmatpush.msra.mxu2 %v55_v12  ;;  %84 = vmatpush.msra.mxu0 %v55_v12 }
  0x1b   :  { %409 = vmatpush.msra.mxu3 %v225_v45  ;;  %244 = vmatpush.msra.mxu1 %v225_v45 }
  0x1c   :  { %399 = vmatpush.msra.mxu2 %v54_v13  ;;  %85 = vmatpush.msra.mxu0 %v54_v13 }
  0x1d   :  { %410 = vmatpush.msra.mxu3 %v224_v48  ;;  %245 = vmatpush.msra.mxu1 %v224_v48 }
  0x1e   :  { %400 = vmatpush.msra.mxu2 %v53_v14  ;;  %86 = vmatpush.msra.mxu0 %v53_v14 }
  0x1f   :  { %411 = vmatpush.msra.mxu3 %v223_v49  ;;  %246 = vmatpush.msra.mxu1 %v223_v49 }
  0x20   :  { %401 = vmatpush.msra.mxu2 %v52_v15  ;;  %87 = vmatpush.msra.mxu0 %v52_v15 }
  0x21   :  { %136 = vmatmul.f32.vlgmr.msra.gmra.mxu2 %v36_v16  ;;  %88 = vmatmul.f32.vlgmr.msra.gmra.mxu0 %v20_v17 }
  0x22   :  { %412 = vmatpush.msra.mxu3 %v222_v50  ;;  %247 = vmatpush.msra.mxu1 %v222_v50 }
  0x24   :  { %413 = vmatpush.msra.mxu3 %v221_v51  ;;  %248 = vmatpush.msra.mxu1 %v221_v51 }
  0x26   :  { %414 = vmatpush.msra.mxu3 %v220_v54  ;;  %249 = vmatpush.msra.mxu1 %v220_v54 }
  0x28   :  { %415 = vmatpush.msra.mxu3 %v219_v55  ;;  %250 = vmatpush.msra.mxu1 %v219_v55 }
  0x29   :  { %139 = vmatmul.f32.gmra.mxu2 %v37_v18  ;;  %91 = vmatmul.f32.gmra.mxu0 %v21_v19 }
  0x2a   :  { %416 = vmatpush.msra.mxu3 %v218_v56  ;;  %251 = vmatpush.msra.mxu1 %v218_v56 }
  0x2c   :  { %417 = vmatpush.msra.mxu3 %v217_v59  ;;  %252 = vmatpush.msra.mxu1 %v217_v59 }
  0x31   :  { %142 = vmatmul.f32.gmra.mxu2 %v38_v20  ;;  %94 = vmatmul.f32.gmra.mxu0 %v22_v21 }
  0x39   :  { %145 = vmatmul.f32.gmra.mxu2 %v39_v22  ;;  %97 = vmatmul.f32.gmra.mxu0 %v23_v23 }
  0x41   :  { %148 = vmatmul.f32.gmra.mxu2 %v40_v24  ;;  %100 = vmatmul.f32.gmra.mxu0 %v24_v25 }
  0x49   :  { %151 = vmatmul.f32.gmra.mxu2 %v41_v26  ;;  %103 = vmatmul.f32.gmra.mxu0 %v25_v27 }
  0x51   :  { %154 = vmatmul.f32.gmra.mxu2 %v42_v28  ;;  %106 = vmatmul.f32.gmra.mxu0 %v26_v29 }
  0x59   :  { %157 = vmatmul.f32.gmra.mxu2 %v43_v30  ;;  %109 = vmatmul.f32.gmra.mxu0 %v27_v31 }
  0x61   :  { %160 = vmatmul.f32.gmra.mxu2 %v44_v32  ;;  %112 = vmatmul.f32.gmra.mxu0 %v28_v33 }
  0x69   :  { %163 = vmatmul.f32.gmra.mxu2 %v45_v34  ;;  %115 = vmatmul.f32.gmra.mxu0 %v29_v35 }
  0x71   :  { %166 = vmatmul.f32.gmra.mxu2 %v46_v40  ;;  %118 = vmatmul.f32.gmra.mxu0 %v30_v41 }
  0x79   :  { %169 = vmatmul.f32.gmra.mxu2 %v47_v46  ;;  %121 = vmatmul.f32.gmra.mxu0 %v31_v47 }
  0x81   :  { %172 = vmatmul.f32.gmra.mxu2 %v48_v52  ;;  %124 = vmatmul.f32.gmra.mxu0 %v32_v53 }
  0x89   :  { %175 = vmatmul.f32.gmra.mxu2 %v49_v57  ;;  %127 = vmatmul.f32.gmra.mxu0 %v33_v58 }
  0x91   :  { %178 = vmatmul.f32.gmra.mxu2 %v50_v60  ;;  %130 = vmatmul.f32.gmra.mxu0 %v34_v61 }
  0x99   :  { %181 = vmatmul.f32.gmra.mxu2 %v51_v62  ;;  %133 = vmatmul.f32.gmra.mxu0 %v35_v63 }
  0x9e   :  { %v89_v1 = vpop.f32.mrf.mxu0 }
  0x9f   :  { %v90_v2 = vadd.f32 %v645_v0, %v89_v1 }
  0xa1   :  { %v185_v3 = vmax.f32 %v90_v2, 0.0 }
  0xa3   :  { %253 = vmatmul.f32.vlgmr.msra.gmra.mxu1 %v185_v3 }
  0xa4   :  { %v137_v4 = vpop.f32.mrf.mxu2 }
  0xa5   :  { %v138_v5 = vadd.f32 %v645_v0, %v137_v4 }
  0xa6   :  { %v92_v6 = vpop.f32.mrf.mxu0 }
  0xa7   :  { %v201_v7 = vmax.f32 %v138_v5, 0.0  ;;  %v93_v8 = vadd.f32 %v645_v0, %v92_v6 }
  0xa9   :  { %301 = vmatmul.f32.vlgmr.msra.gmra.mxu3 %v201_v7  ;;  %v186_v9 = vmax.f32 %v93_v8, 0.0 }
  0xab   :  { %256 = vmatmul.f32.gmra.mxu1 %v186_v9 }
  0xac   :  { %v140_v10 = vpop.f32.mrf.mxu2 }
  0xad   :  { %v141_v11 = vadd.f32 %v645_v0, %v140_v10 }
  0xae   :  { %v95_v12 = vpop.f32.mrf.mxu0 }
  0xaf   :  { %v202_v13 = vmax.f32 %v141_v11, 0.0  ;;  %v96_v14 = vadd.f32 %v645_v0, %v95_v12 }
  0xb1   :  { %304 = vmatmul.f32.gmra.mxu3 %v202_v13  ;;  %v187_v15 = vmax.f32 %v96_v14, 0.0 }
  0xb3   :  { %259 = vmatmul.f32.gmra.mxu1 %v187_v15 }
  0xb4   :  { %v143_v16 = vpop.f32.mrf.mxu2 }
  0xb5   :  { %v144_v17 = vadd.f32 %v645_v0, %v143_v16 }
  0xb6   :  { %v98_v18 = vpop.f32.mrf.mxu0 }
  0xb7   :  { %v203_v19 = vmax.f32 %v144_v17, 0.0  ;;  %v99_v20 = vadd.f32 %v645_v0, %v98_v18 }
  0xb9   :  { %307 = vmatmul.f32.gmra.mxu3 %v203_v19  ;;  %v188_v21 = vmax.f32 %v99_v20, 0.0 }
  0xbb   :  { %262 = vmatmul.f32.gmra.mxu1 %v188_v21 }
  0xbc   :  { %v146_v22 = vpop.f32.mrf.mxu2 }
  0xbd   :  { %v147_v23 = vadd.f32 %v645_v0, %v146_v22 }
  0xbe   :  { %v101_v24 = vpop.f32.mrf.mxu0 }
  0xbf   :  { %v204_v25 = vmax.f32 %v147_v23, 0.0  ;;  %v102_v26 = vadd.f32 %v645_v0, %v101_v24 }
  0xc1   :  { %310 = vmatmul.f32.gmra.mxu3 %v204_v25  ;;  %v189_v27 = vmax.f32 %v102_v26, 0.0 }
  0xc3   :  { %265 = vmatmul.f32.gmra.mxu1 %v189_v27 }
  0xc4   :  { %v149_v28 = vpop.f32.mrf.mxu2 }
  0xc5   :  { %v150_v29 = vadd.f32 %v645_v0, %v149_v28 }
  0xc6   :  { %v104_v30 = vpop.f32.mrf.mxu0 }
  0xc7   :  { %v205_v31 = vmax.f32 %v150_v29, 0.0  ;;  %v105_v32 = vadd.f32 %v645_v0, %v104_v30 }
  0xc9   :  { %313 = vmatmul.f32.gmra.mxu3 %v205_v31  ;;  %v190_v33 = vmax.f32 %v105_v32, 0.0 }
  0xcb   :  { %268 = vmatmul.f32.gmra.mxu1 %v190_v33  ;;  %v682_v33 = vld [vmem:[%s816_s4] ss:$0 sm:$0xff] }
  0xcc   :  { %v152_v34 = vpop.f32.mrf.mxu2 }
  0xcd   :  { %v153_v35 = vadd.f32 %v645_v0, %v152_v34 }
  0xce   :  { %v107_v36 = vpop.f32.mrf.mxu0 }
  0xcf   :  { %v206_v37 = vmax.f32 %v153_v35, 0.0  ;;  %v108_v38 = vadd.f32 %v645_v0, %v107_v36 }
  0xd1   :  { %316 = vmatmul.f32.gmra.mxu3 %v206_v37  ;;  %v191_v39 = vmax.f32 %v108_v38, 0.0 }
  0xd3   :  { %271 = vmatmul.f32.gmra.mxu1 %v191_v39 }
  0xd4   :  { %v155_v40 = vpop.f32.mrf.mxu2 }
  0xd5   :  { %v156_v41 = vadd.f32 %v645_v0, %v155_v40 }
  0xd6   :  { %v110_v42 = vpop.f32.mrf.mxu0 }
  0xd7   :  { %v207_v43 = vmax.f32 %v156_v41, 0.0  ;;  %v111_v44 = vadd.f32 %v645_v0, %v110_v42 }
  0xd9   :  { %319 = vmatmul.f32.gmra.mxu3 %v207_v43  ;;  %v192_v45 = vmax.f32 %v111_v44, 0.0 }
  0xdb   :  { %274 = vmatmul.f32.gmra.mxu1 %v192_v45 }
  0xdc   :  { %v158_v46 = vpop.f32.mrf.mxu2 }
  0xdd   :  { %v159_v47 = vadd.f32 %v645_v0, %v158_v46 }
  0xde   :  { %v113_v48 = vpop.f32.mrf.mxu0 }
  0xdf   :  { %v208_v49 = vmax.f32 %v159_v47, 0.0  ;;  %v114_v50 = vadd.f32 %v645_v0, %v113_v48 }
  0xe1   :  { %322 = vmatmul.f32.gmra.mxu3 %v208_v49  ;;  %v193_v51 = vmax.f32 %v114_v50, 0.0 }
  0xe3   :  { %277 = vmatmul.f32.gmra.mxu1 %v193_v51 }
  0xe4   :  { %v161_v52 = vpop.f32.mrf.mxu2 }
  0xe5   :  { %v162_v53 = vadd.f32 %v645_v0, %v161_v52 }
  0xe6   :  { %v116_v54 = vpop.f32.mrf.mxu0 }
  0xe7   :  { %v209_v55 = vmax.f32 %v162_v53, 0.0  ;;  %v117_v56 = vadd.f32 %v645_v0, %v116_v54 }
  0xe9   :  { %325 = vmatmul.f32.gmra.mxu3 %v209_v55  ;;  %v194_v57 = vmax.f32 %v117_v56, 0.0 }
  0xeb   :  { %280 = vmatmul.f32.gmra.mxu1 %v194_v57 }
  0xec   :  { %v164_v58 = vpop.f32.mrf.mxu2 }
  0xed   :  { %v165_v59 = vadd.f32 %v645_v0, %v164_v58 }
  0xee   :  { %v119_v60 = vpop.f32.mrf.mxu0 }
  0xef   :  { %v210_v61 = vmax.f32 %v165_v59, 0.0  ;;  %v120_v62 = vadd.f32 %v645_v0, %v119_v60 }
  0xf1   :  { %328 = vmatmul.f32.gmra.mxu3 %v210_v61  ;;  %v195_v63 = vmax.f32 %v120_v62, 0.0 }
  0xf3   :  { %283 = vmatmul.f32.gmra.mxu1 %v195_v63 }
  0xf4   :  { %v167_v1 = vpop.f32.mrf.mxu2 }
  0xf5   :  { %v168_v2 = vadd.f32 %v645_v0, %v167_v1 }
  0xf6   :  { %v122_v3 = vpop.f32.mrf.mxu0 }
  0xf7   :  { %v211_v4 = vmax.f32 %v168_v2, 0.0  ;;  %v123_v5 = vadd.f32 %v645_v0, %v122_v3 }
  0xf9   :  { %331 = vmatmul.f32.gmra.mxu3 %v211_v4  ;;  %v196_v6 = vmax.f32 %v123_v5, 0.0 }
  0xfb   :  { %286 = vmatmul.f32.gmra.mxu1 %v196_v6 }
  0xfc   :  { %v170_v7 = vpop.f32.mrf.mxu2 }
  0xfd   :  { %v171_v8 = vadd.f32 %v645_v0, %v170_v7 }
  0xfe   :  { %v125_v9 = vpop.f32.mrf.mxu0 }
  0xff   :  { %v212_v10 = vmax.f32 %v171_v8, 0.0  ;;  %v126_v11 = vadd.f32 %v645_v0, %v125_v9 }
 0x101   :  { %334 = vmatmul.f32.gmra.mxu3 %v212_v10  ;;  %v197_v12 = vmax.f32 %v126_v11, 0.0 }
 0x103   :  { %289 = vmatmul.f32.gmra.mxu1 %v197_v12 }
 0x104   :  { %v173_v13 = vpop.f32.mrf.mxu2 }
 0x105   :  { %v174_v14 = vadd.f32 %v645_v0, %v173_v13 }
 0x106   :  { %v128_v15 = vpop.f32.mrf.mxu0 }
 0x107   :  { %v213_v16 = vmax.f32 %v174_v14, 0.0  ;;  %v129_v17 = vadd.f32 %v645_v0, %v128_v15 }
 0x109   :  { %337 = vmatmul.f32.gmra.mxu3 %v213_v16  ;;  %v198_v18 = vmax.f32 %v129_v17, 0.0 }
 0x10b   :  { %292 = vmatmul.f32.gmra.mxu1 %v198_v18 }
 0x10c   :  { %v176_v19 = vpop.f32.mrf.mxu2 }
 0x10d   :  { %v177_v20 = vadd.f32 %v645_v0, %v176_v19 }
 0x10e   :  { %v131_v21 = vpop.f32.mrf.mxu0 }
 0x10f   :  { %v214_v22 = vmax.f32 %v177_v20, 0.0  ;;  %v132_v23 = vadd.f32 %v645_v0, %v131_v21 }
 0x111   :  { %340 = vmatmul.f32.gmra.mxu3 %v214_v22  ;;  %v199_v24 = vmax.f32 %v132_v23, 0.0 }
 0x113   :  { %295 = vmatmul.f32.gmra.mxu1 %v199_v24 }
 0x114   :  { %v179_v25 = vpop.f32.mrf.mxu2 }
 0x115   :  { %v180_v26 = vadd.f32 %v645_v0, %v179_v25 }
 0x116   :  { %v134_v27 = vpop.f32.mrf.mxu0 }
 0x117   :  { %v215_v28 = vmax.f32 %v180_v26, 0.0  ;;  %v135_v29 = vadd.f32 %v645_v0, %v134_v27 }
 0x119   :  { %343 = vmatmul.f32.gmra.mxu3 %v215_v28  ;;  %v200_v30 = vmax.f32 %v135_v29, 0.0 }
 0x11b   :  { %298 = vmatmul.f32.gmra.mxu1 %v200_v30 }
 0x11c   :  { %v182_v31 = vpop.f32.mrf.mxu2 }
 0x11d   :  { %v183_v32 = vadd.f32 %v645_v0, %v182_v31 }
 0x11f   :  { %v216_v34 = vmax.f32 %v183_v32, 0.0 }
 0x120   :  { %v254_v35 = vpop.f32.mrf.mxu1 }
 0x121   :  { %346 = vmatmul.f32.gmra.mxu3 %v216_v34  ;;  %v255_v36 = vadd.f32 %v682_v33, %v254_v35 }
 0x123   :  { %350 = vst [vmem:[%s817_s5] sm:$0xff] %v255_v36 }
 0x128   :  { %v257_v37 = vpop.f32.mrf.mxu1 }
 0x129   :  { %v258_v38 = vadd.f32 %v682_v33, %v257_v37 }
 0x12b   :  { %351 = vst [vmem:[%s817_s5 + $0x8] sm:$0xff] %v258_v38 }
 0x12c   :  { %v302_v0 = vpop.f32.mrf.mxu3 }
 0x12d   :  { %v303_v39 = vadd.f32 %v682_v33, %v302_v0 }
 0x12f   :  { %366 = vst [vmem:[%s817_s5 + $0x80] sm:$0xff] %v303_v39 }
 0x130   :  { %v260_v40 = vpop.f32.mrf.mxu1 }
 0x131   :  { %v261_v41 = vadd.f32 %v682_v33, %v260_v40 }
 0x133   :  { %352 = vst [vmem:[%s817_s5 + $0x10] sm:$0xff] %v261_v41 }
 0x134   :  { %v305_v42 = vpop.f32.mrf.mxu3 }
 0x135   :  { %v306_v43 = vadd.f32 %v682_v33, %v305_v42 }
 0x137   :  { %367 = vst [vmem:[%s817_s5 + $0x88] sm:$0xff] %v306_v43 }
 0x138   :  { %v263_v44 = vpop.f32.mrf.mxu1 }
 0x139   :  { %v264_v45 = vadd.f32 %v682_v33, %v263_v44 }
 0x13b   :  { %353 = vst [vmem:[%s817_s5 + $0x18] sm:$0xff] %v264_v45 }
 0x13c   :  { %v308_v46 = vpop.f32.mrf.mxu3 }
 0x13d   :  { %v309_v47 = vadd.f32 %v682_v33, %v308_v46 }
 0x13f   :  { %368 = vst [vmem:[%s817_s5 + $0x90] sm:$0xff] %v309_v47 }
 0x140   :  { %v266_v48 = vpop.f32.mrf.mxu1 }
 0x141   :  { %v267_v49 = vadd.f32 %v682_v33, %v266_v48 }
 0x143   :  { %354 = vst [vmem:[%s817_s5 + $0x20] sm:$0xff] %v267_v49 }
 0x144   :  { %v311_v50 = vpop.f32.mrf.mxu3 }
 0x145   :  { %v312_v51 = vadd.f32 %v682_v33, %v311_v50 }
 0x147   :  { %369 = vst [vmem:[%s817_s5 + $0x98] sm:$0xff] %v312_v51 }
 0x148   :  { %v269_v52 = vpop.f32.mrf.mxu1 }
 0x149   :  { %v270_v53 = vadd.f32 %v682_v33, %v269_v52 }
 0x14b   :  { %355 = vst [vmem:[%s817_s5 + $0x28] sm:$0xff] %v270_v53 }
 0x14c   :  { %v314_v54 = vpop.f32.mrf.mxu3 }
 0x14d   :  { %v315_v55 = vadd.f32 %v682_v33, %v314_v54 }
 0x14f   :  { %370 = vst [vmem:[%s817_s5 + $0xa0] sm:$0xff] %v315_v55 }
 0x150   :  { %v272_v56 = vpop.f32.mrf.mxu1 }
 0x151   :  { %v273_v57 = vadd.f32 %v682_v33, %v272_v56 }
 0x153   :  { %356 = vst [vmem:[%s817_s5 + $0x30] sm:$0xff] %v273_v57 }
 0x154   :  { %v317_v58 = vpop.f32.mrf.mxu3 }
 0x155   :  { %v318_v59 = vadd.f32 %v682_v33, %v317_v58 }
 0x157   :  { %371 = vst [vmem:[%s817_s5 + $0xa8] sm:$0xff] %v318_v59 }
 0x158   :  { %v275_v60 = vpop.f32.mrf.mxu1 }
 0x159   :  { %v276_v61 = vadd.f32 %v682_v33, %v275_v60 }
 0x15b   :  { %357 = vst [vmem:[%s817_s5 + $0x38] sm:$0xff] %v276_v61 }
 0x15c   :  { %v320_v62 = vpop.f32.mrf.mxu3 }
 0x15d   :  { %v321_v63 = vadd.f32 %v682_v33, %v320_v62 }
 0x15f   :  { %372 = vst [vmem:[%s817_s5 + $0xb0] sm:$0xff] %v321_v63 }
 0x160   :  { %v278_v1 = vpop.f32.mrf.mxu1 }
 0x161   :  { %v279_v2 = vadd.f32 %v682_v33, %v278_v1 }
 0x163   :  { %358 = vst [vmem:[%s817_s5 + $0x40] sm:$0xff] %v279_v2 }
 0x164   :  { %v323_v3 = vpop.f32.mrf.mxu3 }
 0x165   :  { %v324_v4 = vadd.f32 %v682_v33, %v323_v3 }
 0x167   :  { %373 = vst [vmem:[%s817_s5 + $0xb8] sm:$0xff] %v324_v4 }
 0x168   :  { %v281_v5 = vpop.f32.mrf.mxu1 }
 0x169   :  { %v282_v6 = vadd.f32 %v682_v33, %v281_v5 }
 0x16b   :  { %359 = vst [vmem:[%s817_s5 + $0x48] sm:$0xff] %v282_v6 }
 0x16c   :  { %v326_v7 = vpop.f32.mrf.mxu3 }
 0x16d   :  { %v327_v8 = vadd.f32 %v682_v33, %v326_v7 }
 0x16f   :  { %374 = vst [vmem:[%s817_s5 + $0xc0] sm:$0xff] %v327_v8 }
 0x170   :  { %v284_v9 = vpop.f32.mrf.mxu1 }
 0x171   :  { %v285_v10 = vadd.f32 %v682_v33, %v284_v9 }
 0x173   :  { %360 = vst [vmem:[%s817_s5 + $0x50] sm:$0xff] %v285_v10 }
 0x174   :  { %v329_v11 = vpop.f32.mrf.mxu3 }
 0x175   :  { %v330_v12 = vadd.f32 %v682_v33, %v329_v11 }
 0x177   :  { %375 = vst [vmem:[%s817_s5 + $0xc8] sm:$0xff] %v330_v12 }
 0x178   :  { %v287_v13 = vpop.f32.mrf.mxu1 }
 0x179   :  { %v288_v14 = vadd.f32 %v682_v33, %v287_v13 }
 0x17b   :  { %361 = vst [vmem:[%s817_s5 + $0x58] sm:$0xff] %v288_v14 }
 0x17c   :  { %v332_v15 = vpop.f32.mrf.mxu3 }
 0x17d   :  { %v333_v16 = vadd.f32 %v682_v33, %v332_v15 }
 0x17f   :  { %376 = vst [vmem:[%s817_s5 + $0xd0] sm:$0xff] %v333_v16 }
 0x180   :  { %v290_v17 = vpop.f32.mrf.mxu1 }
 0x181   :  { %v291_v18 = vadd.f32 %v682_v33, %v290_v17 }
 0x183   :  { %362 = vst [vmem:[%s817_s5 + $0x60] sm:$0xff] %v291_v18 }
 0x184   :  { %v335_v19 = vpop.f32.mrf.mxu3 }
 0x185   :  { %v336_v20 = vadd.f32 %v682_v33, %v335_v19 }
 0x187   :  { %377 = vst [vmem:[%s817_s5 + $0xd8] sm:$0xff] %v336_v20 }
 0x188   :  { %v293_v21 = vpop.f32.mrf.mxu1 }
 0x189   :  { %v294_v22 = vadd.f32 %v682_v33, %v293_v21 }
 0x18b   :  { %363 = vst [vmem:[%s817_s5 + $0x68] sm:$0xff] %v294_v22 }
 0x18c   :  { %v338_v23 = vpop.f32.mrf.mxu3 }
 0x18d   :  { %v339_v24 = vadd.f32 %v682_v33, %v338_v23 }
 0x18f   :  { %378 = vst [vmem:[%s817_s5 + $0xe0] sm:$0xff] %v339_v24 }
 0x190   :  { %v296_v25 = vpop.f32.mrf.mxu1 }
 0x191   :  { %v297_v26 = vadd.f32 %v682_v33, %v296_v25 }
 0x193   :  { %364 = vst [vmem:[%s817_s5 + $0x70] sm:$0xff] %v297_v26 }
 0x194   :  { %v341_v27 = vpop.f32.mrf.mxu3 }
 0x195   :  { %v342_v28 = vadd.f32 %v682_v33, %v341_v27 }
 0x197   :  { %379 = vst [vmem:[%s817_s5 + $0xe8] sm:$0xff] %v342_v28 }
 0x198   :  { %v299_v29 = vpop.f32.mrf.mxu1 }
 0x199   :  { %v300_v30 = vadd.f32 %v682_v33, %v299_v29 }
 0x19b   :  { %365 = vst [vmem:[%s817_s5 + $0x78] sm:$0xff] %v300_v30 }
 0x19c   :  { %v344_v31 = vpop.f32.mrf.mxu3 }
 0x19d   :  { %v345_v32 = vadd.f32 %v682_v33, %v344_v31 }
 0x19f   :  { %380 = vst [vmem:[%s817_s5 + $0xf0] sm:$0xff] %v345_v32 }
 0x1a4   :  { %v347_v34 = vpop.f32.mrf.mxu3 }
 0x1a5   :  { %v348_v35 = vadd.f32 %v682_v33, %v347_v34 }
 0x1a7   :  { %381 = vst [vmem:[%s817_s5 + $0xf8] sm:$0xff] %v348_v35 }

</bundles_post_ra>
